<compile_context>
chip_gen: v6e
topology: v6e:2x2x1
jax: 0.10.0
libtpu: 0.0.40
codegen_flags: <defaults>
</compile_context>

<pallas_src>
import jax
import jax.numpy as jnp
from jax import lax
from jax.experimental import pallas as pl
from jax.experimental.pallas import tpu as pltpu

_SLAB = 16  # rows per in-register slab inside the kernel (multiple of 8 sublanes)


def _round_up(x, m):
    return ((x + m - 1) // m) * m


def convkb_kernel(h_ref, r_ref, t_ref, wfc_ref, sel_ref, wc_ref, bc_ref, bfc_ref, o_ref):
    """Fused conv1d(k=1) + ReLU + FC for one (rows, L) lane-packed batch tile.

    h/r/t_ref : (rows, L) compute dtype, L = pack * E_pad (batch rows packed on lanes)
    wfc_ref   : (F, L)    compute dtype, FC weight rows tiled across the packed lanes
    sel_ref   : (L, pack) f32, segment-sum selector (sel[l, j] = 1 iff l // E_pad == j)
    wc_ref    : (3, F) f32 SMEM   conv1d weights
    bc_ref    : (F,)   f32 SMEM   conv1d bias
    bfc_ref   : (1,)   f32 SMEM   fc bias
    o_ref     : (rows, pack) f32  per-row scores
    """
    num_filters = wc_ref.shape[1]
    rows, L = h_ref.shape
    cdt = h_ref.dtype
    num_slabs = rows // _SLAB

    # Hoisted above the slab loop: SMEM conv scalars (cast once to the compute dtype) ...
    w0 = [wc_ref[0, f].astype(cdt) for f in range(num_filters)]
    w1 = [wc_ref[1, f].astype(cdt) for f in range(num_filters)]
    w2 = [wc_ref[2, f].astype(cdt) for f in range(num_filters)]
    bc = [bc_ref[f].astype(cdt) for f in range(num_filters)]
    b_fc = bfc_ref[0]
    # ... the FC-weight rows pre-broadcast to one slab, and the segment-sum selector.
    wfc = wfc_ref[...]
    wrow = [jnp.broadcast_to(wfc[f, :], (_SLAB, L)) for f in range(num_filters)]
    sel = sel_ref[...]

    def slab_body(s, carry):
        start = pl.multiple_of(s * _SLAB, _SLAB)
        idx = pl.ds(start, _SLAB)
        h = h_ref[idx, :]
        r = r_ref[idx, :]
        t = t_ref[idx, :]

        # Filter f = 0 initializes the accumulator (no zero-fill + extra add pass).
        z = jnp.maximum(w0[0] * h + w1[0] * r + w2[0] * t + bc[0], 0.0)
        acc = (z * wrow[0]).astype(jnp.float32)
        for f in range(1, num_filters):
            z = jnp.maximum(w0[f] * h + w1[f] * r + w2[f] * t + bc[f], 0.0)
            acc = acc + (z * wrow[f]).astype(jnp.float32)

        # Segmented lane sum -> per-batch-row score (MXU; off the VALU critical path).
        scores = jnp.dot(acc, sel, preferred_element_type=jnp.float32)  # (_SLAB, pack)
        o_ref[idx, :] = scores + b_fc
        return carry

    lax.fori_loop(0, num_slabs, slab_body, 0)


def convkb_forward(h, r, t, w_conv, b_conv, w_fc, b_fc, *,
                   compute_dtype=jnp.float32, max_tile_bytes=1 << 20):
    """ConvKB forward (eval mode).

    h, r, t : (B, E) float32
    w_conv  : (3, F) float32   (PyTorch conv1d.weight of shape (F, 3, 1), squeezed/transposed)
    b_conv  : (F,)   float32
    w_fc    : (F*E,) float32   (PyTorch fc.weight of shape (1, F*E), squeezed; order f*E + e)
    b_fc    : (1,)   float32
    compute_dtype : jnp.float32 (exact) or jnp.bfloat16 (faster VPU path on v6e/v7x)
    returns : (B, 1) float32
    """
    B, E = h.shape
    num_filters = w_conv.shape[1]
    w_fc2d = w_fc.reshape(num_filters, E)           # matches PyTorch flatten order f*E + e

    # Lane packing: pad E to the next power of two <= 128 so 128 lanes are always dense.
    if E <= 128:
        E_pad = pl.next_power_of_2(E)
        pack = 128 // E_pad
    else:
        E_pad = _round_up(E, 128)
        pack = 1
    L = pack * E_pad

    # Batch-tile sizing: ~max_tile_bytes per input array per step, multiple of _SLAB, and
    # >= 2 grid steps once the batch is large (v7x megacore sharding of the parallel axis).
    itemsize = jnp.dtype(compute_dtype).itemsize
    max_rows = max(_SLAB, (max_tile_bytes // (L * itemsize)) // _SLAB * _SLAB)
    bg = _round_up(-(-B // pack), _SLAB)            # packed rows needed, slab-aligned
    if bg > max_rows:
        tbg = max_rows
    elif bg >= 512:
        tbg = _round_up(-(-bg // 2), _SLAB)         # force >= 2 grid steps
    else:
        tbg = bg
    bg_pad = _round_up(bg, tbg)
    B_pad = bg_pad * pack
    grid = (bg_pad // tbg,)

    def prep(x):
        x = x.astype(compute_dtype)
        if B_pad != B or E_pad != E:                # single fused pad (rows + columns)
            x = jnp.pad(x, ((0, B_pad - B), (0, E_pad - E)))
        return x.reshape(bg_pad, L)

    hp, rp, tp = prep(h), prep(r), prep(t)

    # FC weight: zero-pad the embed dim (padded lanes contribute 0), tile across packed lanes.
    wfc_tiled = jnp.tile(jnp.pad(w_fc2d, ((0, 0), (0, E_pad - E))), (1, pack))
    wfc_tiled = wfc_tiled.astype(compute_dtype)                               # (F, L)
    # Segment-sum selector: column j sums the E_pad-wide lane group of packed row j.
    sel = jnp.repeat(jnp.eye(pack, dtype=jnp.float32), E_pad, axis=0)         # (L, pack)

    out = pl.pallas_call(
        convkb_kernel,
        out_shape=jax.ShapeDtypeStruct((bg_pad, pack), jnp.float32),
        grid_spec=pltpu.PrefetchScalarGridSpec(
            num_scalar_prefetch=0,
            grid=grid,
            in_specs=[
                pl.BlockSpec((tbg, L), lambda i: (i, 0)),             # h (lane-packed)
                pl.BlockSpec((tbg, L), lambda i: (i, 0)),             # r
                pl.BlockSpec((tbg, L), lambda i: (i, 0)),             # t
                pl.BlockSpec((num_filters, L), lambda i: (0, 0)),     # fc weight, lane-tiled
                pl.BlockSpec((L, pack), lambda i: (0, 0)),            # segment-sum selector
                pl.BlockSpec(memory_space=pltpu.MemorySpace.SMEM),    # conv weight (3, F)
                pl.BlockSpec(memory_space=pltpu.MemorySpace.SMEM),    # conv bias (F,)
                pl.BlockSpec(memory_space=pltpu.MemorySpace.SMEM),    # fc bias (1,)
            ],
            out_specs=pl.BlockSpec((tbg, pack), lambda i: (i, 0)),
        ),
        compiler_params=pltpu.CompilerParams(
            dimension_semantics=("parallel",)),
    )(hp, rp, tp, wfc_tiled, sel, w_conv, b_conv, b_fc)

    # out[g, j] = score of batch row g*pack + j  ->  (B, 1)
    return out.reshape(bg_pad * pack)[:B].reshape(B, 1)


def convkb_reference(h, r, t, w_conv, b_conv, w_fc, b_fc):
    """Pure-JAX reference mirroring the PyTorch forward exactly (eval mode)."""
    x = jnp.stack([h, r, t], axis=1)                              # (B, 3, E)
    conv = jnp.einsum('cf,bce->bfe', w_conv, x) + b_conv[None, :, None]
    act = jnp.maximum(conv, 0.0)                                  # (B, F, E)
    flat = act.reshape(act.shape[0], -1)                          # (B, F*E), order f*E+e
    return flat @ w_fc[:, None] + b_fc[None, :]                   # (B, 1)


def _make_inputs(key, batch, embed_size, num_filters):
    kh, kr, kt, kwc, kbc, kwf, kbf = jax.random.split(key, 7)
    h = jax.random.normal(kh, (batch, embed_size), dtype=jnp.float32)
    r = jax.random.normal(kr, (batch, embed_size), dtype=jnp.float32)
    t = jax.random.normal(kt, (batch, embed_size), dtype=jnp.float32)
    # Shapes implied by nn.Conv1d(3, F, 1) / nn.Linear(F*E, 1).
    w_conv = 0.5 * jax.random.normal(kwc, (3, num_filters), dtype=jnp.float32)
    b_conv = 0.1 * jax.random.normal(kbc, (num_filters,), dtype=jnp.float32)
    w_fc = 0.05 * jax.random.normal(kwf, (num_filters * embed_size,), dtype=jnp.float32)
    b_fc = 0.1 * jax.random.normal(kbf, (1,), dtype=jnp.float32)
    return h, r, t, w_conv, b_conv, w_fc, b_fc


if __name__ == "__main__":
    key = jax.random.PRNGKey(0)
    k1, k2 = jax.random.split(key)

    # Case 1: E=32 (pack=4), F=16, batch=8 — exact f32 path.
    args = _make_inputs(k1, batch=8, embed_size=32, num_filters=16)
    out = jax.block_until_ready(convkb_forward(*args))
    ref = convkb_reference(*args)
    assert out.shape == (8, 1)
    assert jnp.allclose(out, ref, atol=1e-4, rtol=1e-4), (out, ref)

    # Case 1b: same inputs, bf16 compute path (v6e/v7x fast path) — looser tolerance.
    out_bf16 = jax.block_until_ready(convkb_forward(*args, compute_dtype=jnp.bfloat16))
    assert out_bf16.shape == (8, 1)
    assert jnp.allclose(out_bf16, ref, atol=5e-2, rtol=5e-2), (out_bf16, ref)

    # Case 2: E=50 (padded to 64, pack=2), F=8, batch=33 — generalized lane packing + ragged batch.
    args2 = _make_inputs(k2, batch=33, embed_size=50, num_filters=8)
    out2 = jax.block_until_ready(convkb_forward(*args2))
    ref2 = convkb_reference(*args2)
    assert out2.shape == (33, 1)
    assert jnp.allclose(out2, ref2, atol=1e-4, rtol=1e-4), (out2, ref2)

    print("KERNEL_OK")
</pallas_src>

<mosaic_0001>
module attributes {stable_mosaic.version = 11 : i64} {
  func.func @convkb_kernel(%arg0: i32, %arg1: memref<16x128xf32, #tpu.memory_space<vmem>>, %arg2: memref<16x128xf32, #tpu.memory_space<vmem>>, %arg3: memref<16x128xf32, #tpu.memory_space<vmem>>, %arg4: memref<16x128xf32, #tpu.memory_space<vmem>>, %arg5: memref<128x4xf32, #tpu.memory_space<vmem>>, %arg6: memref<3x16xf32, #tpu.memory_space<smem>>, %arg7: memref<16xf32, #tpu.memory_space<smem>>, %arg8: memref<1xf32, #tpu.memory_space<smem>>, %arg9: memref<16x4xf32, #tpu.memory_space<vmem>>) attributes {dimension_semantics = [#tpu.dimension_semantics<parallel>], iteration_bounds = array<i64: 1>, scalar_prefetch = 0 : i64, scratch_operands = 0 : i64, tpu.core_type = #tpu.core_type<tc>, window_params = [{transform_indices = @transform_0, window_bounds = array<i64: 16, 128>}, {transform_indices = @transform_1, window_bounds = array<i64: 16, 128>}, {transform_indices = @transform_2, window_bounds = array<i64: 16, 128>}, {pipeline_mode = #tpu.pipeline_mode<synchronous>, transform_indices = @transform_3, window_bounds = array<i64: 16, 128>}, {pipeline_mode = #tpu.pipeline_mode<synchronous>, transform_indices = @transform_4, window_bounds = array<i64: 128, 4>}, {transform_indices = @transform_5, window_bounds = array<i64: 3, 16>}, {transform_indices = @transform_6, window_bounds = array<i64: 16>}, {transform_indices = @transform_7, window_bounds = array<i64: 1>}, {transform_indices = @transform_8, window_bounds = array<i64: 16, 4>}]} {
    %c0 = arith.constant 0 : index
    %c0_0 = arith.constant 0 : index
    %0 = memref.load %arg6[%c0, %c0_0] : memref<3x16xf32, #tpu.memory_space<smem>>
    %c0_1 = arith.constant 0 : index
    %c1 = arith.constant 1 : index
    %1 = memref.load %arg6[%c0_1, %c1] : memref<3x16xf32, #tpu.memory_space<smem>>
    %c0_2 = arith.constant 0 : index
    %c2 = arith.constant 2 : index
    %2 = memref.load %arg6[%c0_2, %c2] : memref<3x16xf32, #tpu.memory_space<smem>>
    %c0_3 = arith.constant 0 : index
    %c3 = arith.constant 3 : index
    %3 = memref.load %arg6[%c0_3, %c3] : memref<3x16xf32, #tpu.memory_space<smem>>
    %c0_4 = arith.constant 0 : index
    %c4 = arith.constant 4 : index
    %4 = memref.load %arg6[%c0_4, %c4] : memref<3x16xf32, #tpu.memory_space<smem>>
    %c0_5 = arith.constant 0 : index
    %c5 = arith.constant 5 : index
    %5 = memref.load %arg6[%c0_5, %c5] : memref<3x16xf32, #tpu.memory_space<smem>>
    %c0_6 = arith.constant 0 : index
    %c6 = arith.constant 6 : index
    %6 = memref.load %arg6[%c0_6, %c6] : memref<3x16xf32, #tpu.memory_space<smem>>
    %c0_7 = arith.constant 0 : index
    %c7 = arith.constant 7 : index
    %7 = memref.load %arg6[%c0_7, %c7] : memref<3x16xf32, #tpu.memory_space<smem>>
    %c0_8 = arith.constant 0 : index
    %c8 = arith.constant 8 : index
    %8 = memref.load %arg6[%c0_8, %c8] : memref<3x16xf32, #tpu.memory_space<smem>>
    %c0_9 = arith.constant 0 : index
    %c9 = arith.constant 9 : index
    %9 = memref.load %arg6[%c0_9, %c9] : memref<3x16xf32, #tpu.memory_space<smem>>
    %c0_10 = arith.constant 0 : index
    %c10 = arith.constant 10 : index
    %10 = memref.load %arg6[%c0_10, %c10] : memref<3x16xf32, #tpu.memory_space<smem>>
    %c0_11 = arith.constant 0 : index
    %c11 = arith.constant 11 : index
    %11 = memref.load %arg6[%c0_11, %c11] : memref<3x16xf32, #tpu.memory_space<smem>>
    %c0_12 = arith.constant 0 : index
    %c12 = arith.constant 12 : index
    %12 = memref.load %arg6[%c0_12, %c12] : memref<3x16xf32, #tpu.memory_space<smem>>
    %c0_13 = arith.constant 0 : index
    %c13 = arith.constant 13 : index
    %13 = memref.load %arg6[%c0_13, %c13] : memref<3x16xf32, #tpu.memory_space<smem>>
    %c0_14 = arith.constant 0 : index
    %c14 = arith.constant 14 : index
    %14 = memref.load %arg6[%c0_14, %c14] : memref<3x16xf32, #tpu.memory_space<smem>>
    %c0_15 = arith.constant 0 : index
    %c15 = arith.constant 15 : index
    %15 = memref.load %arg6[%c0_15, %c15] : memref<3x16xf32, #tpu.memory_space<smem>>
    %c1_16 = arith.constant 1 : index
    %c0_17 = arith.constant 0 : index
    %16 = memref.load %arg6[%c1_16, %c0_17] : memref<3x16xf32, #tpu.memory_space<smem>>
    %c1_18 = arith.constant 1 : index
    %c1_19 = arith.constant 1 : index
    %17 = memref.load %arg6[%c1_18, %c1_19] : memref<3x16xf32, #tpu.memory_space<smem>>
    %c1_20 = arith.constant 1 : index
    %c2_21 = arith.constant 2 : index
    %18 = memref.load %arg6[%c1_20, %c2_21] : memref<3x16xf32, #tpu.memory_space<smem>>
    %c1_22 = arith.constant 1 : index
    %c3_23 = arith.constant 3 : index
    %19 = memref.load %arg6[%c1_22, %c3_23] : memref<3x16xf32, #tpu.memory_space<smem>>
    %c1_24 = arith.constant 1 : index
    %c4_25 = arith.constant 4 : index
    %20 = memref.load %arg6[%c1_24, %c4_25] : memref<3x16xf32, #tpu.memory_space<smem>>
    %c1_26 = arith.constant 1 : index
    %c5_27 = arith.constant 5 : index
    %21 = memref.load %arg6[%c1_26, %c5_27] : memref<3x16xf32, #tpu.memory_space<smem>>
    %c1_28 = arith.constant 1 : index
    %c6_29 = arith.constant 6 : index
    %22 = memref.load %arg6[%c1_28, %c6_29] : memref<3x16xf32, #tpu.memory_space<smem>>
    %c1_30 = arith.constant 1 : index
    %c7_31 = arith.constant 7 : index
    %23 = memref.load %arg6[%c1_30, %c7_31] : memref<3x16xf32, #tpu.memory_space<smem>>
    %c1_32 = arith.constant 1 : index
    %c8_33 = arith.constant 8 : index
    %24 = memref.load %arg6[%c1_32, %c8_33] : memref<3x16xf32, #tpu.memory_space<smem>>
    %c1_34 = arith.constant 1 : index
    %c9_35 = arith.constant 9 : index
    %25 = memref.load %arg6[%c1_34, %c9_35] : memref<3x16xf32, #tpu.memory_space<smem>>
    %c1_36 = arith.constant 1 : index
    %c10_37 = arith.constant 10 : index
    %26 = memref.load %arg6[%c1_36, %c10_37] : memref<3x16xf32, #tpu.memory_space<smem>>
    %c1_38 = arith.constant 1 : index
    %c11_39 = arith.constant 11 : index
    %27 = memref.load %arg6[%c1_38, %c11_39] : memref<3x16xf32, #tpu.memory_space<smem>>
    %c1_40 = arith.constant 1 : index
    %c12_41 = arith.constant 12 : index
    %28 = memref.load %arg6[%c1_40, %c12_41] : memref<3x16xf32, #tpu.memory_space<smem>>
    %c1_42 = arith.constant 1 : index
    %c13_43 = arith.constant 13 : index
    %29 = memref.load %arg6[%c1_42, %c13_43] : memref<3x16xf32, #tpu.memory_space<smem>>
    %c1_44 = arith.constant 1 : index
    %c14_45 = arith.constant 14 : index
    %30 = memref.load %arg6[%c1_44, %c14_45] : memref<3x16xf32, #tpu.memory_space<smem>>
    %c1_46 = arith.constant 1 : index
    %c15_47 = arith.constant 15 : index
    %31 = memref.load %arg6[%c1_46, %c15_47] : memref<3x16xf32, #tpu.memory_space<smem>>
    %c2_48 = arith.constant 2 : index
    %c0_49 = arith.constant 0 : index
    %32 = memref.load %arg6[%c2_48, %c0_49] : memref<3x16xf32, #tpu.memory_space<smem>>
    %c2_50 = arith.constant 2 : index
    %c1_51 = arith.constant 1 : index
    %33 = memref.load %arg6[%c2_50, %c1_51] : memref<3x16xf32, #tpu.memory_space<smem>>
    %c2_52 = arith.constant 2 : index
    %c2_53 = arith.constant 2 : index
    %34 = memref.load %arg6[%c2_52, %c2_53] : memref<3x16xf32, #tpu.memory_space<smem>>
    %c2_54 = arith.constant 2 : index
    %c3_55 = arith.constant 3 : index
    %35 = memref.load %arg6[%c2_54, %c3_55] : memref<3x16xf32, #tpu.memory_space<smem>>
    %c2_56 = arith.constant 2 : index
    %c4_57 = arith.constant 4 : index
    %36 = memref.load %arg6[%c2_56, %c4_57] : memref<3x16xf32, #tpu.memory_space<smem>>
    %c2_58 = arith.constant 2 : index
    %c5_59 = arith.constant 5 : index
    %37 = memref.load %arg6[%c2_58, %c5_59] : memref<3x16xf32, #tpu.memory_space<smem>>
    %c2_60 = arith.constant 2 : index
    %c6_61 = arith.constant 6 : index
    %38 = memref.load %arg6[%c2_60, %c6_61] : memref<3x16xf32, #tpu.memory_space<smem>>
    %c2_62 = arith.constant 2 : index
    %c7_63 = arith.constant 7 : index
    %39 = memref.load %arg6[%c2_62, %c7_63] : memref<3x16xf32, #tpu.memory_space<smem>>
    %c2_64 = arith.constant 2 : index
    %c8_65 = arith.constant 8 : index
    %40 = memref.load %arg6[%c2_64, %c8_65] : memref<3x16xf32, #tpu.memory_space<smem>>
    %c2_66 = arith.constant 2 : index
    %c9_67 = arith.constant 9 : index
    %41 = memref.load %arg6[%c2_66, %c9_67] : memref<3x16xf32, #tpu.memory_space<smem>>
    %c2_68 = arith.constant 2 : index
    %c10_69 = arith.constant 10 : index
    %42 = memref.load %arg6[%c2_68, %c10_69] : memref<3x16xf32, #tpu.memory_space<smem>>
    %c2_70 = arith.constant 2 : index
    %c11_71 = arith.constant 11 : index
    %43 = memref.load %arg6[%c2_70, %c11_71] : memref<3x16xf32, #tpu.memory_space<smem>>
    %c2_72 = arith.constant 2 : index
    %c12_73 = arith.constant 12 : index
    %44 = memref.load %arg6[%c2_72, %c12_73] : memref<3x16xf32, #tpu.memory_space<smem>>
    %c2_74 = arith.constant 2 : index
    %c13_75 = arith.constant 13 : index
    %45 = memref.load %arg6[%c2_74, %c13_75] : memref<3x16xf32, #tpu.memory_space<smem>>
    %c2_76 = arith.constant 2 : index
    %c14_77 = arith.constant 14 : index
    %46 = memref.load %arg6[%c2_76, %c14_77] : memref<3x16xf32, #tpu.memory_space<smem>>
    %c2_78 = arith.constant 2 : index
    %c15_79 = arith.constant 15 : index
    %47 = memref.load %arg6[%c2_78, %c15_79] : memref<3x16xf32, #tpu.memory_space<smem>>
    %c0_80 = arith.constant 0 : index
    %48 = memref.load %arg7[%c0_80] : memref<16xf32, #tpu.memory_space<smem>>
    %c1_81 = arith.constant 1 : index
    %49 = memref.load %arg7[%c1_81] : memref<16xf32, #tpu.memory_space<smem>>
    %c2_82 = arith.constant 2 : index
    %50 = memref.load %arg7[%c2_82] : memref<16xf32, #tpu.memory_space<smem>>
    %c3_83 = arith.constant 3 : index
    %51 = memref.load %arg7[%c3_83] : memref<16xf32, #tpu.memory_space<smem>>
    %c4_84 = arith.constant 4 : index
    %52 = memref.load %arg7[%c4_84] : memref<16xf32, #tpu.memory_space<smem>>
    %c5_85 = arith.constant 5 : index
    %53 = memref.load %arg7[%c5_85] : memref<16xf32, #tpu.memory_space<smem>>
    %c6_86 = arith.constant 6 : index
    %54 = memref.load %arg7[%c6_86] : memref<16xf32, #tpu.memory_space<smem>>
    %c7_87 = arith.constant 7 : index
    %55 = memref.load %arg7[%c7_87] : memref<16xf32, #tpu.memory_space<smem>>
    %c8_88 = arith.constant 8 : index
    %56 = memref.load %arg7[%c8_88] : memref<16xf32, #tpu.memory_space<smem>>
    %c9_89 = arith.constant 9 : index
    %57 = memref.load %arg7[%c9_89] : memref<16xf32, #tpu.memory_space<smem>>
    %c10_90 = arith.constant 10 : index
    %58 = memref.load %arg7[%c10_90] : memref<16xf32, #tpu.memory_space<smem>>
    %c11_91 = arith.constant 11 : index
    %59 = memref.load %arg7[%c11_91] : memref<16xf32, #tpu.memory_space<smem>>
    %c12_92 = arith.constant 12 : index
    %60 = memref.load %arg7[%c12_92] : memref<16xf32, #tpu.memory_space<smem>>
    %c13_93 = arith.constant 13 : index
    %61 = memref.load %arg7[%c13_93] : memref<16xf32, #tpu.memory_space<smem>>
    %c14_94 = arith.constant 14 : index
    %62 = memref.load %arg7[%c14_94] : memref<16xf32, #tpu.memory_space<smem>>
    %c15_95 = arith.constant 15 : index
    %63 = memref.load %arg7[%c15_95] : memref<16xf32, #tpu.memory_space<smem>>
    %c0_96 = arith.constant 0 : index
    %64 = memref.load %arg8[%c0_96] : memref<1xf32, #tpu.memory_space<smem>>
    %c0_97 = arith.constant 0 : index
    %c0_98 = arith.constant 0 : index
    %65 = vector.load %arg4[%c0_97, %c0_98] : memref<16x128xf32, #tpu.memory_space<vmem>>, vector<16x128xf32>
    %66 = vector.extract_strided_slice %65 {offsets = [0, 0], sizes = [1, 128], strides = [1, 1]} : vector<16x128xf32> to vector<1x128xf32>
    %67 = vector.shape_cast %66 : vector<1x128xf32> to vector<128xf32>
    %68 = vector.shape_cast %67 : vector<128xf32> to vector<1x128xf32>
    %69 = vector.broadcast %68 : vector<1x128xf32> to vector<16x128xf32>
    %70 = vector.extract_strided_slice %65 {offsets = [1, 0], sizes = [1, 128], strides = [1, 1]} : vector<16x128xf32> to vector<1x128xf32>
    %71 = vector.shape_cast %70 : vector<1x128xf32> to vector<128xf32>
    %72 = vector.shape_cast %71 : vector<128xf32> to vector<1x128xf32>
    %73 = vector.broadcast %72 : vector<1x128xf32> to vector<16x128xf32>
    %74 = vector.extract_strided_slice %65 {offsets = [2, 0], sizes = [1, 128], strides = [1, 1]} : vector<16x128xf32> to vector<1x128xf32>
    %75 = vector.shape_cast %74 : vector<1x128xf32> to vector<128xf32>
    %76 = vector.shape_cast %75 : vector<128xf32> to vector<1x128xf32>
    %77 = vector.broadcast %76 : vector<1x128xf32> to vector<16x128xf32>
    %78 = vector.extract_strided_slice %65 {offsets = [3, 0], sizes = [1, 128], strides = [1, 1]} : vector<16x128xf32> to vector<1x128xf32>
    %79 = vector.shape_cast %78 : vector<1x128xf32> to vector<128xf32>
    %80 = vector.shape_cast %79 : vector<128xf32> to vector<1x128xf32>
    %81 = vector.broadcast %80 : vector<1x128xf32> to vector<16x128xf32>
    %82 = vector.extract_strided_slice %65 {offsets = [4, 0], sizes = [1, 128], strides = [1, 1]} : vector<16x128xf32> to vector<1x128xf32>
    %83 = vector.shape_cast %82 : vector<1x128xf32> to vector<128xf32>
    %84 = vector.shape_cast %83 : vector<128xf32> to vector<1x128xf32>
    %85 = vector.broadcast %84 : vector<1x128xf32> to vector<16x128xf32>
    %86 = vector.extract_strided_slice %65 {offsets = [5, 0], sizes = [1, 128], strides = [1, 1]} : vector<16x128xf32> to vector<1x128xf32>
    %87 = vector.shape_cast %86 : vector<1x128xf32> to vector<128xf32>
    %88 = vector.shape_cast %87 : vector<128xf32> to vector<1x128xf32>
    %89 = vector.broadcast %88 : vector<1x128xf32> to vector<16x128xf32>
    %90 = vector.extract_strided_slice %65 {offsets = [6, 0], sizes = [1, 128], strides = [1, 1]} : vector<16x128xf32> to vector<1x128xf32>
    %91 = vector.shape_cast %90 : vector<1x128xf32> to vector<128xf32>
    %92 = vector.shape_cast %91 : vector<128xf32> to vector<1x128xf32>
    %93 = vector.broadcast %92 : vector<1x128xf32> to vector<16x128xf32>
    %94 = vector.extract_strided_slice %65 {offsets = [7, 0], sizes = [1, 128], strides = [1, 1]} : vector<16x128xf32> to vector<1x128xf32>
    %95 = vector.shape_cast %94 : vector<1x128xf32> to vector<128xf32>
    %96 = vector.shape_cast %95 : vector<128xf32> to vector<1x128xf32>
    %97 = vector.broadcast %96 : vector<1x128xf32> to vector<16x128xf32>
    %98 = vector.extract_strided_slice %65 {offsets = [8, 0], sizes = [1, 128], strides = [1, 1]} : vector<16x128xf32> to vector<1x128xf32>
    %99 = vector.shape_cast %98 : vector<1x128xf32> to vector<128xf32>
    %100 = vector.shape_cast %99 : vector<128xf32> to vector<1x128xf32>
    %101 = vector.broadcast %100 : vector<1x128xf32> to vector<16x128xf32>
    %102 = vector.extract_strided_slice %65 {offsets = [9, 0], sizes = [1, 128], strides = [1, 1]} : vector<16x128xf32> to vector<1x128xf32>
    %103 = vector.shape_cast %102 : vector<1x128xf32> to vector<128xf32>
    %104 = vector.shape_cast %103 : vector<128xf32> to vector<1x128xf32>
    %105 = vector.broadcast %104 : vector<1x128xf32> to vector<16x128xf32>
    %106 = vector.extract_strided_slice %65 {offsets = [10, 0], sizes = [1, 128], strides = [1, 1]} : vector<16x128xf32> to vector<1x128xf32>
    %107 = vector.shape_cast %106 : vector<1x128xf32> to vector<128xf32>
    %108 = vector.shape_cast %107 : vector<128xf32> to vector<1x128xf32>
    %109 = vector.broadcast %108 : vector<1x128xf32> to vector<16x128xf32>
    %110 = vector.extract_strided_slice %65 {offsets = [11, 0], sizes = [1, 128], strides = [1, 1]} : vector<16x128xf32> to vector<1x128xf32>
    %111 = vector.shape_cast %110 : vector<1x128xf32> to vector<128xf32>
    %112 = vector.shape_cast %111 : vector<128xf32> to vector<1x128xf32>
    %113 = vector.broadcast %112 : vector<1x128xf32> to vector<16x128xf32>
    %114 = vector.extract_strided_slice %65 {offsets = [12, 0], sizes = [1, 128], strides = [1, 1]} : vector<16x128xf32> to vector<1x128xf32>
    %115 = vector.shape_cast %114 : vector<1x128xf32> to vector<128xf32>
    %116 = vector.shape_cast %115 : vector<128xf32> to vector<1x128xf32>
    %117 = vector.broadcast %116 : vector<1x128xf32> to vector<16x128xf32>
    %118 = vector.extract_strided_slice %65 {offsets = [13, 0], sizes = [1, 128], strides = [1, 1]} : vector<16x128xf32> to vector<1x128xf32>
    %119 = vector.shape_cast %118 : vector<1x128xf32> to vector<128xf32>
    %120 = vector.shape_cast %119 : vector<128xf32> to vector<1x128xf32>
    %121 = vector.broadcast %120 : vector<1x128xf32> to vector<16x128xf32>
    %122 = vector.extract_strided_slice %65 {offsets = [14, 0], sizes = [1, 128], strides = [1, 1]} : vector<16x128xf32> to vector<1x128xf32>
    %123 = vector.shape_cast %122 : vector<1x128xf32> to vector<128xf32>
    %124 = vector.shape_cast %123 : vector<128xf32> to vector<1x128xf32>
    %125 = vector.broadcast %124 : vector<1x128xf32> to vector<16x128xf32>
    %126 = vector.extract_strided_slice %65 {offsets = [15, 0], sizes = [1, 128], strides = [1, 1]} : vector<16x128xf32> to vector<1x128xf32>
    %127 = vector.shape_cast %126 : vector<1x128xf32> to vector<128xf32>
    %128 = vector.shape_cast %127 : vector<128xf32> to vector<1x128xf32>
    %129 = vector.broadcast %128 : vector<1x128xf32> to vector<16x128xf32>
    %c0_99 = arith.constant 0 : index
    %c0_100 = arith.constant 0 : index
    %130 = vector.load %arg5[%c0_99, %c0_100] : memref<128x4xf32, #tpu.memory_space<vmem>>, vector<128x4xf32>
    %c0_i32 = arith.constant 0 : i32
    %c16_i32 = arith.constant 16 : i32
    %131 = arith.muli %c0_i32, %c16_i32 : i32
    %132 = tpu.assume_multiple %131, 16 : i32
    %133 = arith.index_cast %132 : i32 to index
    %c0_101 = arith.constant 0 : index
    %134 = vector.load %arg1[%133, %c0_101] : memref<16x128xf32, #tpu.memory_space<vmem>>, vector<16x128xf32>
    %135 = arith.index_cast %132 : i32 to index
    %c0_102 = arith.constant 0 : index
    %136 = vector.load %arg2[%135, %c0_102] : memref<16x128xf32, #tpu.memory_space<vmem>>, vector<16x128xf32>
    %137 = arith.index_cast %132 : i32 to index
    %c0_103 = arith.constant 0 : index
    %138 = vector.load %arg3[%137, %c0_103] : memref<16x128xf32, #tpu.memory_space<vmem>>, vector<16x128xf32>
    %139 = vector.broadcast %0 : f32 to vector<16x128xf32>
    %140 = arith.mulf %139, %134 : vector<16x128xf32>
    %141 = vector.broadcast %16 : f32 to vector<16x128xf32>
    %142 = arith.mulf %141, %136 : vector<16x128xf32>
    %143 = arith.addf %140, %142 : vector<16x128xf32>
    %144 = vector.broadcast %32 : f32 to vector<16x128xf32>
    %145 = arith.mulf %144, %138 : vector<16x128xf32>
    %146 = arith.addf %143, %145 : vector<16x128xf32>
    %147 = vector.broadcast %48 : f32 to vector<16x128xf32>
    %148 = arith.addf %146, %147 : vector<16x128xf32>
    %cst = arith.constant 0.000000e+00 : f32
    %149 = vector.broadcast %cst : f32 to vector<16x128xf32>
    %150 = arith.maximumf %148, %149 : vector<16x128xf32>
    %151 = arith.mulf %150, %69 : vector<16x128xf32>
    %152 = vector.broadcast %1 : f32 to vector<16x128xf32>
    %153 = arith.mulf %152, %134 : vector<16x128xf32>
    %154 = vector.broadcast %17 : f32 to vector<16x128xf32>
    %155 = arith.mulf %154, %136 : vector<16x128xf32>
    %156 = arith.addf %153, %155 : vector<16x128xf32>
    %157 = vector.broadcast %33 : f32 to vector<16x128xf32>
    %158 = arith.mulf %157, %138 : vector<16x128xf32>
    %159 = arith.addf %156, %158 : vector<16x128xf32>
    %160 = vector.broadcast %49 : f32 to vector<16x128xf32>
    %161 = arith.addf %159, %160 : vector<16x128xf32>
    %cst_104 = arith.constant 0.000000e+00 : f32
    %162 = vector.broadcast %cst_104 : f32 to vector<16x128xf32>
    %163 = arith.maximumf %161, %162 : vector<16x128xf32>
    %164 = arith.mulf %163, %73 : vector<16x128xf32>
    %165 = arith.addf %151, %164 : vector<16x128xf32>
    %166 = vector.broadcast %2 : f32 to vector<16x128xf32>
    %167 = arith.mulf %166, %134 : vector<16x128xf32>
    %168 = vector.broadcast %18 : f32 to vector<16x128xf32>
    %169 = arith.mulf %168, %136 : vector<16x128xf32>
    %170 = arith.addf %167, %169 : vector<16x128xf32>
    %171 = vector.broadcast %34 : f32 to vector<16x128xf32>
    %172 = arith.mulf %171, %138 : vector<16x128xf32>
    %173 = arith.addf %170, %172 : vector<16x128xf32>
    %174 = vector.broadcast %50 : f32 to vector<16x128xf32>
    %175 = arith.addf %173, %174 : vector<16x128xf32>
    %cst_105 = arith.constant 0.000000e+00 : f32
    %176 = vector.broadcast %cst_105 : f32 to vector<16x128xf32>
    %177 = arith.maximumf %175, %176 : vector<16x128xf32>
    %178 = arith.mulf %177, %77 : vector<16x128xf32>
    %179 = arith.addf %165, %178 : vector<16x128xf32>
    %180 = vector.broadcast %3 : f32 to vector<16x128xf32>
    %181 = arith.mulf %180, %134 : vector<16x128xf32>
    %182 = vector.broadcast %19 : f32 to vector<16x128xf32>
    %183 = arith.mulf %182, %136 : vector<16x128xf32>
    %184 = arith.addf %181, %183 : vector<16x128xf32>
    %185 = vector.broadcast %35 : f32 to vector<16x128xf32>
    %186 = arith.mulf %185, %138 : vector<16x128xf32>
    %187 = arith.addf %184, %186 : vector<16x128xf32>
    %188 = vector.broadcast %51 : f32 to vector<16x128xf32>
    %189 = arith.addf %187, %188 : vector<16x128xf32>
    %cst_106 = arith.constant 0.000000e+00 : f32
    %190 = vector.broadcast %cst_106 : f32 to vector<16x128xf32>
    %191 = arith.maximumf %189, %190 : vector<16x128xf32>
    %192 = arith.mulf %191, %81 : vector<16x128xf32>
    %193 = arith.addf %179, %192 : vector<16x128xf32>
    %194 = vector.broadcast %4 : f32 to vector<16x128xf32>
    %195 = arith.mulf %194, %134 : vector<16x128xf32>
    %196 = vector.broadcast %20 : f32 to vector<16x128xf32>
    %197 = arith.mulf %196, %136 : vector<16x128xf32>
    %198 = arith.addf %195, %197 : vector<16x128xf32>
    %199 = vector.broadcast %36 : f32 to vector<16x128xf32>
    %200 = arith.mulf %199, %138 : vector<16x128xf32>
    %201 = arith.addf %198, %200 : vector<16x128xf32>
    %202 = vector.broadcast %52 : f32 to vector<16x128xf32>
    %203 = arith.addf %201, %202 : vector<16x128xf32>
    %cst_107 = arith.constant 0.000000e+00 : f32
    %204 = vector.broadcast %cst_107 : f32 to vector<16x128xf32>
    %205 = arith.maximumf %203, %204 : vector<16x128xf32>
    %206 = arith.mulf %205, %85 : vector<16x128xf32>
    %207 = arith.addf %193, %206 : vector<16x128xf32>
    %208 = vector.broadcast %5 : f32 to vector<16x128xf32>
    %209 = arith.mulf %208, %134 : vector<16x128xf32>
    %210 = vector.broadcast %21 : f32 to vector<16x128xf32>
    %211 = arith.mulf %210, %136 : vector<16x128xf32>
    %212 = arith.addf %209, %211 : vector<16x128xf32>
    %213 = vector.broadcast %37 : f32 to vector<16x128xf32>
    %214 = arith.mulf %213, %138 : vector<16x128xf32>
    %215 = arith.addf %212, %214 : vector<16x128xf32>
    %216 = vector.broadcast %53 : f32 to vector<16x128xf32>
    %217 = arith.addf %215, %216 : vector<16x128xf32>
    %cst_108 = arith.constant 0.000000e+00 : f32
    %218 = vector.broadcast %cst_108 : f32 to vector<16x128xf32>
    %219 = arith.maximumf %217, %218 : vector<16x128xf32>
    %220 = arith.mulf %219, %89 : vector<16x128xf32>
    %221 = arith.addf %207, %220 : vector<16x128xf32>
    %222 = vector.broadcast %6 : f32 to vector<16x128xf32>
    %223 = arith.mulf %222, %134 : vector<16x128xf32>
    %224 = vector.broadcast %22 : f32 to vector<16x128xf32>
    %225 = arith.mulf %224, %136 : vector<16x128xf32>
    %226 = arith.addf %223, %225 : vector<16x128xf32>
    %227 = vector.broadcast %38 : f32 to vector<16x128xf32>
    %228 = arith.mulf %227, %138 : vector<16x128xf32>
    %229 = arith.addf %226, %228 : vector<16x128xf32>
    %230 = vector.broadcast %54 : f32 to vector<16x128xf32>
    %231 = arith.addf %229, %230 : vector<16x128xf32>
    %cst_109 = arith.constant 0.000000e+00 : f32
    %232 = vector.broadcast %cst_109 : f32 to vector<16x128xf32>
    %233 = arith.maximumf %231, %232 : vector<16x128xf32>
    %234 = arith.mulf %233, %93 : vector<16x128xf32>
    %235 = arith.addf %221, %234 : vector<16x128xf32>
    %236 = vector.broadcast %7 : f32 to vector<16x128xf32>
    %237 = arith.mulf %236, %134 : vector<16x128xf32>
    %238 = vector.broadcast %23 : f32 to vector<16x128xf32>
    %239 = arith.mulf %238, %136 : vector<16x128xf32>
    %240 = arith.addf %237, %239 : vector<16x128xf32>
    %241 = vector.broadcast %39 : f32 to vector<16x128xf32>
    %242 = arith.mulf %241, %138 : vector<16x128xf32>
    %243 = arith.addf %240, %242 : vector<16x128xf32>
    %244 = vector.broadcast %55 : f32 to vector<16x128xf32>
    %245 = arith.addf %243, %244 : vector<16x128xf32>
    %cst_110 = arith.constant 0.000000e+00 : f32
    %246 = vector.broadcast %cst_110 : f32 to vector<16x128xf32>
    %247 = arith.maximumf %245, %246 : vector<16x128xf32>
    %248 = arith.mulf %247, %97 : vector<16x128xf32>
    %249 = arith.addf %235, %248 : vector<16x128xf32>
    %250 = vector.broadcast %8 : f32 to vector<16x128xf32>
    %251 = arith.mulf %250, %134 : vector<16x128xf32>
    %252 = vector.broadcast %24 : f32 to vector<16x128xf32>
    %253 = arith.mulf %252, %136 : vector<16x128xf32>
    %254 = arith.addf %251, %253 : vector<16x128xf32>
    %255 = vector.broadcast %40 : f32 to vector<16x128xf32>
    %256 = arith.mulf %255, %138 : vector<16x128xf32>
    %257 = arith.addf %254, %256 : vector<16x128xf32>
    %258 = vector.broadcast %56 : f32 to vector<16x128xf32>
    %259 = arith.addf %257, %258 : vector<16x128xf32>
    %cst_111 = arith.constant 0.000000e+00 : f32
    %260 = vector.broadcast %cst_111 : f32 to vector<16x128xf32>
    %261 = arith.maximumf %259, %260 : vector<16x128xf32>
    %262 = arith.mulf %261, %101 : vector<16x128xf32>
    %263 = arith.addf %249, %262 : vector<16x128xf32>
    %264 = vector.broadcast %9 : f32 to vector<16x128xf32>
    %265 = arith.mulf %264, %134 : vector<16x128xf32>
    %266 = vector.broadcast %25 : f32 to vector<16x128xf32>
    %267 = arith.mulf %266, %136 : vector<16x128xf32>
    %268 = arith.addf %265, %267 : vector<16x128xf32>
    %269 = vector.broadcast %41 : f32 to vector<16x128xf32>
    %270 = arith.mulf %269, %138 : vector<16x128xf32>
    %271 = arith.addf %268, %270 : vector<16x128xf32>
    %272 = vector.broadcast %57 : f32 to vector<16x128xf32>
    %273 = arith.addf %271, %272 : vector<16x128xf32>
    %cst_112 = arith.constant 0.000000e+00 : f32
    %274 = vector.broadcast %cst_112 : f32 to vector<16x128xf32>
    %275 = arith.maximumf %273, %274 : vector<16x128xf32>
    %276 = arith.mulf %275, %105 : vector<16x128xf32>
    %277 = arith.addf %263, %276 : vector<16x128xf32>
    %278 = vector.broadcast %10 : f32 to vector<16x128xf32>
    %279 = arith.mulf %278, %134 : vector<16x128xf32>
    %280 = vector.broadcast %26 : f32 to vector<16x128xf32>
    %281 = arith.mulf %280, %136 : vector<16x128xf32>
    %282 = arith.addf %279, %281 : vector<16x128xf32>
    %283 = vector.broadcast %42 : f32 to vector<16x128xf32>
    %284 = arith.mulf %283, %138 : vector<16x128xf32>
    %285 = arith.addf %282, %284 : vector<16x128xf32>
    %286 = vector.broadcast %58 : f32 to vector<16x128xf32>
    %287 = arith.addf %285, %286 : vector<16x128xf32>
    %cst_113 = arith.constant 0.000000e+00 : f32
    %288 = vector.broadcast %cst_113 : f32 to vector<16x128xf32>
    %289 = arith.maximumf %287, %288 : vector<16x128xf32>
    %290 = arith.mulf %289, %109 : vector<16x128xf32>
    %291 = arith.addf %277, %290 : vector<16x128xf32>
    %292 = vector.broadcast %11 : f32 to vector<16x128xf32>
    %293 = arith.mulf %292, %134 : vector<16x128xf32>
    %294 = vector.broadcast %27 : f32 to vector<16x128xf32>
    %295 = arith.mulf %294, %136 : vector<16x128xf32>
    %296 = arith.addf %293, %295 : vector<16x128xf32>
    %297 = vector.broadcast %43 : f32 to vector<16x128xf32>
    %298 = arith.mulf %297, %138 : vector<16x128xf32>
    %299 = arith.addf %296, %298 : vector<16x128xf32>
    %300 = vector.broadcast %59 : f32 to vector<16x128xf32>
    %301 = arith.addf %299, %300 : vector<16x128xf32>
    %cst_114 = arith.constant 0.000000e+00 : f32
    %302 = vector.broadcast %cst_114 : f32 to vector<16x128xf32>
    %303 = arith.maximumf %301, %302 : vector<16x128xf32>
    %304 = arith.mulf %303, %113 : vector<16x128xf32>
    %305 = arith.addf %291, %304 : vector<16x128xf32>
    %306 = vector.broadcast %12 : f32 to vector<16x128xf32>
    %307 = arith.mulf %306, %134 : vector<16x128xf32>
    %308 = vector.broadcast %28 : f32 to vector<16x128xf32>
    %309 = arith.mulf %308, %136 : vector<16x128xf32>
    %310 = arith.addf %307, %309 : vector<16x128xf32>
    %311 = vector.broadcast %44 : f32 to vector<16x128xf32>
    %312 = arith.mulf %311, %138 : vector<16x128xf32>
    %313 = arith.addf %310, %312 : vector<16x128xf32>
    %314 = vector.broadcast %60 : f32 to vector<16x128xf32>
    %315 = arith.addf %313, %314 : vector<16x128xf32>
    %cst_115 = arith.constant 0.000000e+00 : f32
    %316 = vector.broadcast %cst_115 : f32 to vector<16x128xf32>
    %317 = arith.maximumf %315, %316 : vector<16x128xf32>
    %318 = arith.mulf %317, %117 : vector<16x128xf32>
    %319 = arith.addf %305, %318 : vector<16x128xf32>
    %320 = vector.broadcast %13 : f32 to vector<16x128xf32>
    %321 = arith.mulf %320, %134 : vector<16x128xf32>
    %322 = vector.broadcast %29 : f32 to vector<16x128xf32>
    %323 = arith.mulf %322, %136 : vector<16x128xf32>
    %324 = arith.addf %321, %323 : vector<16x128xf32>
    %325 = vector.broadcast %45 : f32 to vector<16x128xf32>
    %326 = arith.mulf %325, %138 : vector<16x128xf32>
    %327 = arith.addf %324, %326 : vector<16x128xf32>
    %328 = vector.broadcast %61 : f32 to vector<16x128xf32>
    %329 = arith.addf %327, %328 : vector<16x128xf32>
    %cst_116 = arith.constant 0.000000e+00 : f32
    %330 = vector.broadcast %cst_116 : f32 to vector<16x128xf32>
    %331 = arith.maximumf %329, %330 : vector<16x128xf32>
    %332 = arith.mulf %331, %121 : vector<16x128xf32>
    %333 = arith.addf %319, %332 : vector<16x128xf32>
    %334 = vector.broadcast %14 : f32 to vector<16x128xf32>
    %335 = arith.mulf %334, %134 : vector<16x128xf32>
    %336 = vector.broadcast %30 : f32 to vector<16x128xf32>
    %337 = arith.mulf %336, %136 : vector<16x128xf32>
    %338 = arith.addf %335, %337 : vector<16x128xf32>
    %339 = vector.broadcast %46 : f32 to vector<16x128xf32>
    %340 = arith.mulf %339, %138 : vector<16x128xf32>
    %341 = arith.addf %338, %340 : vector<16x128xf32>
    %342 = vector.broadcast %62 : f32 to vector<16x128xf32>
    %343 = arith.addf %341, %342 : vector<16x128xf32>
    %cst_117 = arith.constant 0.000000e+00 : f32
    %344 = vector.broadcast %cst_117 : f32 to vector<16x128xf32>
    %345 = arith.maximumf %343, %344 : vector<16x128xf32>
    %346 = arith.mulf %345, %125 : vector<16x128xf32>
    %347 = arith.addf %333, %346 : vector<16x128xf32>
    %348 = vector.broadcast %15 : f32 to vector<16x128xf32>
    %349 = arith.mulf %348, %134 : vector<16x128xf32>
    %350 = vector.broadcast %31 : f32 to vector<16x128xf32>
    %351 = arith.mulf %350, %136 : vector<16x128xf32>
    %352 = arith.addf %349, %351 : vector<16x128xf32>
    %353 = vector.broadcast %47 : f32 to vector<16x128xf32>
    %354 = arith.mulf %353, %138 : vector<16x128xf32>
    %355 = arith.addf %352, %354 : vector<16x128xf32>
    %356 = vector.broadcast %63 : f32 to vector<16x128xf32>
    %357 = arith.addf %355, %356 : vector<16x128xf32>
    %cst_118 = arith.constant 0.000000e+00 : f32
    %358 = vector.broadcast %cst_118 : f32 to vector<16x128xf32>
    %359 = arith.maximumf %357, %358 : vector<16x128xf32>
    %360 = arith.mulf %359, %129 : vector<16x128xf32>
    %361 = arith.addf %347, %360 : vector<16x128xf32>
    %cst_119 = arith.constant dense<0.000000e+00> : vector<16x4xf32>
    %362 = tpu.matmul %361, %130, %cst_119 {dimension_numbers = #tpu.dot_dimension_numbers<[1], [0], [0], [1], [0, 0, 1, 1], [], []>} : vector<16x128xf32>, vector<128x4xf32>, vector<16x4xf32> -> vector<16x4xf32>
    %363 = vector.broadcast %64 : f32 to vector<16x4xf32>
    %364 = arith.addf %362, %363 : vector<16x4xf32>
    %365 = arith.index_cast %132 : i32 to index
    %c0_120 = arith.constant 0 : index
    %366 = vector.load %arg9[%365, %c0_120] : memref<16x4xf32, #tpu.memory_space<vmem>>, vector<16x4xf32>
    tpu.vector_store %arg9[%365, %c0_120], %364 {strides = array<i32>} : memref<16x4xf32, #tpu.memory_space<vmem>>, vector<16x4xf32>,
    %c1_i32 = arith.constant 1 : i32
    return
  }
  func.func @transform_0(%arg0: i32) -> (i32, i32) {
    %c0_i32 = arith.constant 0 : i32
    %c0_i32_0 = arith.constant 0 : i32
    return %arg0, %c0_i32 : i32, i32
  }
  func.func @transform_1(%arg0: i32) -> (i32, i32) {
    %c0_i32 = arith.constant 0 : i32
    %c0_i32_0 = arith.constant 0 : i32
    return %arg0, %c0_i32 : i32, i32
  }
  func.func @transform_2(%arg0: i32) -> (i32, i32) {
    %c0_i32 = arith.constant 0 : i32
    %c0_i32_0 = arith.constant 0 : i32
    return %arg0, %c0_i32 : i32, i32
  }
  func.func @transform_3(%arg0: i32) -> (i32, i32) {
    %c0_i32 = arith.constant 0 : i32
    %c0_i32_0 = arith.constant 0 : i32
    %c0_i32_1 = arith.constant 0 : i32
    return %c0_i32, %c0_i32_0 : i32, i32
  }
  func.func @transform_4(%arg0: i32) -> (i32, i32) {
    %c0_i32 = arith.constant 0 : i32
    %c0_i32_0 = arith.constant 0 : i32
    %c0_i32_1 = arith.constant 0 : i32
    return %c0_i32, %c0_i32_0 : i32, i32
  }
  func.func @transform_5(%arg0: i32) -> (i32, i32) {
    %c0_i32 = arith.constant 0 : i32
    %c0_i32_0 = arith.constant 0 : i32
    %c0_i32_1 = arith.constant 0 : i32
    return %c0_i32, %c0_i32_0 : i32, i32
  }
  func.func @transform_6(%arg0: i32) -> i32 {
    %c0_i32 = arith.constant 0 : i32
    %c0_i32_0 = arith.constant 0 : i32
    return %c0_i32 : i32
  }
  func.func @transform_7(%arg0: i32) -> i32 {
    %c0_i32 = arith.constant 0 : i32
    %c0_i32_0 = arith.constant 0 : i32
    return %c0_i32 : i32
  }
  func.func @transform_8(%arg0: i32) -> (i32, i32) {
    %c0_i32 = arith.constant 0 : i32
    %c0_i32_0 = arith.constant 0 : i32
    return %arg0, %c0_i32 : i32, i32
  }
}

</mosaic_0001>

<bundles_post_ra>
// kernel: tpu_custom_call.1
= control target key start
LH: loop header
LB: loop body
LE: loop exit
PB: predicated region body
PF: predicated region fallthrough
CT: control target
= control target key end

     0   :  { %14 = vsyncpa [#allocation4], 0  ;;  %s1546_s0 = inlined_call_operand.vmem [shape: f32[16,128], index: 0, kind: input, shape index: {}]   ;;  %s1547_s1 = inlined_call_operand.vmem [shape: f32[16,128], index: 1, kind: input, shape index: {}]   ;;  %s1548_s2 = inlined_call_operand.vmem [shape: f32[16,128], index: 2, kind: input, shape index: {}]   ;;  %s1549_s3 = inlined_call_operand.vmem [shape: f32[16,128], index: 3, kind: input, shape index: {}]   ;;  %s1550_s4 = inlined_call_operand.vmem [shape: f32[128,4], index: 4, kind: input, shape index: {}]   ;;  %s1551_s5 = inlined_call_operand.vmem [shape: f32[3,16], index: 5, kind: input, shape index: {}]   ;;  %s1552_s6 = inlined_call_operand.vmem [shape: f32[16], index: 6, kind: input, shape index: {}]   ;;  %s1553_s7 = inlined_call_operand.<no memory space> [shape: f32[1], index: 7, kind: input, shape index: {}]   ;;  %s1554_s8 = inlined_call_operand.vmem [shape: f32[16,4], index: 8, kind: output, shape index: {}]  }
   0x1   :  { %s32_s29 = sshll.u32 %s1551_s5, 4  ;;  %s33_s29 = int_to_ptr.vmem [resolvable:$true] %s32_s29 }
   0x2   :  { %15 = vsyncpa [#allocation6], 0  ;;  %s42_s10 = sshll.u32 %s1552_s6, 4  ;;  %s760_s11 = scalar_lea.vmem %s33_s29, 64  ;;  %s43_s10 = int_to_ptr.vmem [resolvable:$true] %s42_s10 }
   0x3   :  { %p761_p0 = scmp.ne.s32.totalorder %s33_s29, %s760_s11  ;;  %p765_p1 = scmp.lt.s32.totalorder %s33_s29, %s33_s29 }
   0x4   :  { %p766_p2 = scmp.lt.s32.totalorder %s760_s11, %s760_s11 }
   0x6   :  { %p767_p3 = por %p766_p2, %p765_p1 }
   0x8   :  { %p768_p4 = pnand %p767_p3, %p761_p0 }
   0xa   :  { %771 = shalt.err (!%p768_p4)
}
   0xb   :  { %s788_s12 = smov [#allocation3]   ;;  %s772_s13 = scalar_lea.vmem %s43_s10, 16 }
   0xc   :  { %35 = dma.vmem_to_smem %s33_s29, 64, %s788_s12, [#allocation4]  }
   0xd   :  { %p773_p5 = scmp.ne.s32.totalorder %s43_s10, %s772_s13  ;;  %p777_p6 = scmp.lt.s32.totalorder %s43_s10, %s43_s10 }
   0xe   :  { %p778_p7 = scmp.lt.s32.totalorder %s772_s13, %s772_s13 }
  0x10   :  { %p779_p8 = por %p778_p7, %p777_p6 }
  0x12   :  { %p780_p9 = pnand %p779_p8, %p773_p5 }
  0x14   :  { %783 = shalt.err (!%p780_p9)
}
  0x15   :  { %s789_s5 = smov [#allocation5]  }
  0x16   :  { %45 = dma.vmem_to_smem %s43_s10, 16, %s789_s5, [#allocation6]  }
  0x17   :  { %784 = dma.done.wait [#allocation4], 64  }
  0x18   :  { %785 = vsyncadd [#allocation4], 4294967232 }
  0x19   :  { %786 = dma.done.wait [#allocation6], 16  }
  0x1a   :  { %787 = vsyncadd [#allocation6], 4294967280 }
  0x1b   :  { %54 = sfence }
  0x1c   :  { %v201_v0 = vld [vmem:[%s1550_s4 + $0x78] sm:$0xff]  ;;  %v200_v1 = vld [vmem:[%s1550_s4 + $0x70] sm:$0xff]  ;;  %s847_s17 = sld [smem:[#allocation3]]  ;;  %v122_v2 = vlaneseq  ;;  %v199_v3 = vld [vmem:[%s1550_s4 + $0x68] sm:$0xff]  ;;  %vm634_vm0 = vcmask 31744  }
  0x1d   :  { %723 = vmatprep.subr.mxu0 %v201_v0  ;;  %s849_s18 = sld [smem:[#allocation3 + $0x1]]  ;;  %v198_v5 = vld [vmem:[%s1550_s4 + $0x60] sm:$0xff]  ;;  %v197_v6 = vld [vmem:[%s1550_s4 + $0x58] sm:$0xff]  ;;  %v885_v13 = vld [vmem:[%s1549_s3 + $0x8] sm:$0xff] }
  0x1e   :  { %724 = vmatpush3.msra.mxu0 %v201_v0  ;;  %s854_s21 = sld [smem:[#allocation3 + $0x2]]  ;;  %v856_v4 = vshrl.u32 %v122_v2, 7  ;;  %v120_v9 = vld [vmem:[%s1549_s3] sm:$0xff]  ;;  %1564 = vst [vmem:[#allocation10_spill] sm:$0xff] %v885_v13  ;;  %v196_v17 = vld [vmem:[%s1550_s4 + $0x50] sm:$0xff]  ;;  %v195_v22 = vld [vmem:[%s1550_s4 + $0x48] sm:$0xff] }
  0x1f   :  { %725 = vmatprep.subr.mxu0 %v200_v1  ;;  %s858_s22 = sld [smem:[#allocation3 + $0x3]]  ;;  %v931_v29 = vld [vmem:[%s1546_s0] sm:$0xff]  ;;  %v936_v30 = vld [vmem:[%s1546_s0 + $0x8] sm:$0xff]  ;;  %v193_v42 = vld [vmem:[%s1550_s4 + $0x38] sm:$0xff] }
  0x20   :  { %1563 = vst [vmem:[#allocation9_spill] sm:$0xff] %v856_v4  ;;  %726 = vmatpush3.msra.mxu0 %v200_v1  ;;  %s863_s25 = sld [smem:[#allocation3 + $0x4]]  ;;  %v124_v7 = vsub.s32 0, %v856_v4  ;;  %v128_v8 = vsub.s32 1, %v856_v4  ;;  %v132_v10 = vsub.s32 2, %v856_v4  ;;  %v136_v11 = vsub.s32 3, %v856_v4 }
  0x21   :  { %727 = vmatprep.subr.mxu0 %v199_v3  ;;  %s868_s28 = sld [smem:[#allocation3 + $0x5]]  ;;  %v140_v12 = vsub.s32 4, %v856_v4  ;;  %v144_v14 = vsub.s32 5, %v856_v4  ;;  %v148_v15 = vsub.s32 6, %v856_v4  ;;  %v1555_v16 = vsub.s32 7, %v856_v4  ;;  %1565 = vst [vmem:[#allocation11_spill] sm:$0xff] %v931_v29 }
  0x22   :  { %728 = vmatpush3.msra.mxu0 %v199_v3  ;;  %s872_s29 = sld [smem:[#allocation3 + $0x6]]  ;;  %v897_v18 = vrot.slane %v120_v9, %v124_v7  ;;  %v899_v19 = vrot.slane %v120_v9, %v128_v8  ;;  %v901_v20 = vrot.slane %v120_v9, %v132_v10  ;;  %v903_v21 = vrot.slane %v120_v9, %v136_v11  ;;  %v194_v33 = vld [vmem:[%s1550_s4 + $0x40] sm:$0xff]  ;;  %v192_v51 = vld [vmem:[%s1550_s4 + $0x30] sm:$0xff]  ;;  %v191_v60 = vld [vmem:[%s1550_s4 + $0x28] sm:$0xff] }
  0x23   :  { %729 = vmatprep.subr.mxu0 %v198_v5  ;;  %s880_s10 = sld [smem:[#allocation3 + $0x7]]  ;;  %v910_v23 = vrot.slane %v120_v9, %v140_v12  ;;  %v912_v24 = vrot.slane %v120_v9, %v144_v14  ;;  %v914_v25 = vrot.slane %v120_v9, %v148_v15  ;;  %v917_v26 = vrot.slane %v885_v13, %v124_v7  ;;  %v1050_v7 = vld [vmem:[%s1547_s1] sm:$0xff] }
  0x24   :  { %730 = vmatpush3.msra.mxu0 %v198_v5  ;;  %s893_s6 = sld [smem:[#allocation3 + $0x8]]  ;;  %v923_v27 = vrot.slane %v120_v9, %v1555_v16  ;;  %v926_v28 = vrot.slane %v885_v13, %v128_v8  ;;  %1566 = vst [vmem:[#allocation12_spill] sm:$0xff] %v936_v30  ;;  %v208_v31 = vstv %s847_s17  ;;  %v228_v32 = vstv %s849_s18  ;;  %v1055_v8 = vld [vmem:[%s1547_s1 + $0x8] sm:$0xff] }
  0x25   :  { %731 = vmatprep.subr.mxu0 %v197_v6  ;;  %s895_s14 = sld [smem:[#allocation3 + $0x9]]  ;;  %v946_v34 = vrot.slane %v885_v13, %v132_v10  ;;  %v949_v35 = vrot.slane %v885_v13, %v136_v11  ;;  %v952_v36 = vrot.slane %v885_v13, %v140_v12  ;;  %v955_v37 = vrot.slane %v885_v13, %v144_v14 }
  0x26   :  { %732 = vmatpush3.msra.mxu0 %v197_v6  ;;  %s908_s16 = sld [smem:[#allocation3 + $0xa]]  ;;  %v960_v38 = vrot.slane %v885_v13, %v148_v15  ;;  %v250_v39 = vstv %s854_s21  ;;  %v272_v40 = vstv %s858_s22  ;;  %v294_v41 = vstv %s863_s25  ;;  %v190_v6 = vld [vmem:[%s1550_s4 + $0x20] sm:$0xff] }
  0x27   :  { %733 = vmatprep.subr.mxu0 %v196_v17  ;;  %s919_s19 = sld [smem:[#allocation3 + $0xb]]  ;;  %1567 = vst [vmem:[#allocation13_spill] sm:$0xff] %v952_v36  ;;  %1568 = vst [vmem:[#allocation14_spill] sm:$0xff] %v955_v37  ;;  %v971_v43 = vmul.f32 %v208_v31, %v931_v29  ;;  %v974_v44 = vmul.f32 %v208_v31, %v936_v30  ;;  %v977_v45 = vmul.f32 %v228_v32, %v931_v29  ;;  %v189_v31 = vld [vmem:[%s1550_s4 + $0x18] sm:$0xff] }
  0x28   :  { %734 = vmatpush3.msra.mxu0 %v196_v17  ;;  %s943_s9 = sld [smem:[#allocation3 + $0xc]]  ;;  %1569 = vst [vmem:[#allocation15_spill] sm:$0xff] %v960_v38  ;;  %v316_v46 = vstv %s868_s28  ;;  %v983_v47 = vmul.f32 %v228_v32, %v936_v30  ;;  %v986_v48 = vmul.f32 %v250_v39, %v931_v29  ;;  %v989_v49 = vmul.f32 %v250_v39, %v936_v30  ;;  %v186_v38 = vld [vmem:[%s1550_s4] sm:$0xff] }
  0x29   :  { %735 = vmatprep.subr.mxu0 %v195_v22  ;;  %s957_s0 = sld [smem:[#allocation3 + $0xd]]  ;;  %v992_v50 = vmul.f32 %v272_v40, %v931_v29  ;;  %v1000_v52 = vmul.f32 %v272_v40, %v936_v30  ;;  %v1003_v53 = vmul.f32 %v294_v41, %v931_v29  ;;  %v338_v54 = vstv %s872_s29 }
  0x2a   :  { %736 = vmatpush3.msra.mxu0 %v195_v22  ;;  %s968_s11 = sld [smem:[#allocation3 + $0xe]]  ;;  %v360_v55 = vstv %s880_s10  ;;  %v1010_v56 = vmul.f32 %v294_v41, %v936_v30  ;;  %v1013_v57 = vmul.f32 %v316_v46, %v931_v29  ;;  %v382_v58 = vstv %s893_s6 }
  0x2b   :  { %737 = vmatprep.subr.mxu0 %v194_v33  ;;  %s980_s21 = sld [smem:[#allocation3 + $0xf]]  ;;  %v404_v59 = vstv %s895_s14  ;;  %v1023_v61 = vmul.f32 %v316_v46, %v936_v30  ;;  %v1026_v62 = vmul.f32 %v338_v54, %v931_v29  ;;  %v1029_v63 = vmul.f32 %v338_v54, %v936_v30  ;;  %v188_v54 = vld [vmem:[%s1550_s4 + $0x10] sm:$0xff] }
  0x2c   :  { %738 = vmatpush3.msra.mxu0 %v194_v33  ;;  %s997_s28 = sld [smem:[#allocation3 + $0x80]]  ;;  %v1032_v0 = vmul.f32 %v360_v55, %v931_v29  ;;  %v1037_v1 = vmul.f32 %v360_v55, %v936_v30  ;;  %v426_v2 = vstv %s908_s16  ;;  %v1058_v9 = vmul.f32 %v382_v58, %v931_v29 }
  0x2d   :  { %739 = vmatprep.subr.mxu0 %v193_v42  ;;  %s1007_s12 = sld [smem:[#allocation3 + $0x81]]  ;;  %v448_v3 = vstv %s919_s19  ;;  %v1061_v10 = vmul.f32 %v382_v58, %v936_v30  ;;  %v1064_v11 = vmul.f32 %v404_v59, %v931_v29  ;;  %v1067_v12 = vmul.f32 %v404_v59, %v936_v30 }
  0x2e   :  { %740 = vmatpush3.msra.mxu0 %v193_v42  ;;  %s1020_s29 = sld [smem:[#allocation3 + $0x82]]  ;;  %v470_v5 = vstv %s943_s9  ;;  %v1072_v14 = vmul.f32 %v426_v2, %v931_v29  ;;  %v1075_v15 = vmul.f32 %v426_v2, %v936_v30  ;;  %v1078_v17 = vmul.f32 %v448_v3, %v931_v29 }
  0x2f   :  { %741 = vmatprep.subr.mxu0 %v192_v51  ;;  %s1034_s10 = sld [smem:[#allocation3 + $0x83]]  ;;  %v492_v22 = vstv %s957_s0  ;;  %v1088_v33 = vmul.f32 %v448_v3, %v936_v30  ;;  %v1091_v39 = vmul.f32 %v470_v5, %v931_v29  ;;  %v1094_v40 = vmul.f32 %v470_v5, %v936_v30 }
  0x30   :  { %742 = vmatpush3.msra.mxu0 %v192_v51  ;;  %s1045_s3 = sld [smem:[#allocation3 + $0x84]]  ;;  %v514_v51 = vstv %s968_s11  ;;  %v1109_v58 = vmul.f32 %v492_v22, %v931_v29  ;;  %v1112_v59 = vmul.f32 %v492_v22, %v936_v30 }
  0x31   :  { %743 = vmatprep.subr.mxu0 %v191_v60  ;;  %s1069_s16 = sld [smem:[#allocation3 + $0x85]] }
  0x32   :  { %744 = vmatpush3.msra.mxu0 %v191_v60  ;;  %s1084_s26 = sld [smem:[#allocation3 + $0x86]]  ;;  %v211_v32 = vstv %s997_s28  ;;  %v1129_v60 = vmul.f32 %v514_v51, %v931_v29 }
  0x33   :  { %745 = vmatprep.subr.mxu0 %v190_v6  ;;  %s1096_s27 = sld [smem:[#allocation3 + $0x87]]  ;;  %v212_v41 = vmul.f32 %v211_v32, %v1050_v7  ;;  %v213_v42 = vmul.f32 %v211_v32, %v1055_v8  ;;  %v231_v46 = vstv %s1007_s12  ;;  %v187_v32 = vld [vmem:[%s1550_s4 + $0x8] sm:$0xff] }
  0x34   :  { %746 = vmatpush3.msra.mxu0 %v190_v6  ;;  %s1105_s0 = sld [smem:[#allocation3 + $0x88]]  ;;  %v253_v55 = vstv %s1020_s29  ;;  %v232_v2 = vmul.f32 %v231_v46, %v1050_v7  ;;  %v233_v3 = vmul.f32 %v231_v46, %v1055_v8  ;;  %1570 = vst [vmem:[#allocation16_spill] sm:$0xff] %v1129_v60  ;;  %v1132_v46 = vmul.f32 %v514_v51, %v936_v30 }
  0x35   :  { %747 = vmatprep.subr.mxu0 %v189_v31  ;;  %s1115_s17 = sld [smem:[#allocation3 + $0x89]]  ;;  %v254_v5 = vmul.f32 %v253_v55, %v1050_v7  ;;  %v255_v6 = vmul.f32 %v253_v55, %v1055_v8  ;;  %v275_v22 = vstv %s1034_s10  ;;  %v1135_v55 = vadd.f32 %v212_v41, %v971_v43 }
  0x36   :  { %748 = vmatpush3.msra.mxu0 %v189_v31  ;;  %s1124_s22 = sld [smem:[#allocation3 + $0x8a]]  ;;  %v297_v16 = vstv %s1045_s3  ;;  %1571 = vst [vmem:[#allocation17_spill] sm:$0xff] %v1132_v46  ;;  %v1138_v31 = vadd.f32 %v213_v42, %v974_v44  ;;  %v276_v13 = vmul.f32 %v275_v22, %v1050_v7  ;;  %v277_v4 = vmul.f32 %v275_v22, %v1055_v8 }
  0x37   :  { %749 = vmatprep.subr.mxu0 %v188_v54  ;;  %s1145_s12 = sld [smem:[#allocation3 + $0x8b]]  ;;  %v298_v51 = vmul.f32 %v297_v16, %v1050_v7  ;;  %v299_v37 = vmul.f32 %v297_v16, %v1055_v8  ;;  %v319_v43 = vstv %s1069_s16  ;;  %v1154_v44 = vadd.f32 %v232_v2, %v977_v45 }
  0x38   :  { %750 = vmatpush3.msra.mxu0 %v188_v54  ;;  %v341_v41 = vstv %s1084_s26  ;;  %s1151_s13 = sld [smem:[#allocation3 + $0x8c]]  ;;  %v1157_v42 = vadd.f32 %v233_v3, %v983_v47  ;;  %v1160_v54 = vadd.f32 %v254_v5, %v986_v48  ;;  %v1163_v22 = vadd.f32 %v255_v6, %v989_v49 }
  0x39   :  { %751 = vmatprep.subr.mxu0 %v187_v32  ;;  %v1166_v16 = vadd.f32 %v276_v13, %v992_v50  ;;  %v1169_v30 = vadd.f32 %v277_v4, %v1000_v52  ;;  %v320_v29 = vmul.f32 %v319_v43, %v1050_v7  ;;  %v321_v45 = vmul.f32 %v319_v43, %v1055_v8  ;;  %s1173_s4 = sld [smem:[#allocation3 + $0x8d]] }
  0x3a   :  { %752 = vmatpush3.msra.mxu0 %v187_v32  ;;  %v342_v47 = vmul.f32 %v341_v41, %v1050_v7  ;;  %v343_v48 = vmul.f32 %v341_v41, %v1055_v8  ;;  %v363_v49 = vstv %s1096_s27  ;;  %v385_v2 = vstv %s1105_s0  ;;  %s1179_s5 = sld [smem:[#allocation3 + $0x100]] }
  0x3b   :  { %753 = vmatprep.subr.mxu0 %v186_v38  ;;  %v1182_v4 = vadd.f32 %v298_v51, %v1003_v53  ;;  %v1185_v13 = vadd.f32 %v299_v37, %v1010_v56  ;;  %v364_v50 = vmul.f32 %v363_v49, %v1050_v7  ;;  %v365_v52 = vmul.f32 %v363_v49, %v1055_v8  ;;  %s1189_s29 = sld [smem:[#allocation3 + $0x101]] }
  0x3c   :  { %754 = vmatpush3.msra.mxu0 %v186_v38  ;;  %v386_v3 = vmul.f32 %v385_v2, %v1050_v7  ;;  %v387_v5 = vmul.f32 %v385_v2, %v1055_v8  ;;  %v407_v6 = vstv %s1115_s17  ;;  %v429_v38 = vstv %s1124_s22  ;;  %s1195_s10 = sld [smem:[#allocation3 + $0x102]] }
  0x3d   :  { %v1198_v53 = vadd.f32 %v320_v29, %v1013_v57  ;;  %v1201_v37 = vadd.f32 %v321_v45, %v1023_v61  ;;  %v408_v56 = vmul.f32 %v407_v6, %v1050_v7  ;;  %v409_v32 = vmul.f32 %v407_v6, %v1055_v8  ;;  %s1205_s6 = sld [smem:[#allocation3 + $0x103]]  ;;  %v1220_v61 = vld [vmem:[%s1548_s2] sm:$0xff] }
  0x3e   :  { %v1208_v51 = vadd.f32 %v342_v47, %v1026_v62  ;;  %v1211_v43 = vadd.f32 %v343_v48, %v1029_v63  ;;  %v430_v29 = vmul.f32 %v429_v38, %v1050_v7  ;;  %v431_v57 = vmul.f32 %v429_v38, %v1055_v8  ;;  %s1215_s14 = sld [smem:[#allocation3 + $0x104]]  ;;  %v1225_v62 = vld [vmem:[%s1548_s2 + $0x8] sm:$0xff] }
  0x3f   :  { %v1228_v63 = vadd.f32 %v364_v50, %v1032_v0  ;;  %v1231_v41 = vadd.f32 %v365_v52, %v1037_v1  ;;  %v1234_v45 = vadd.f32 %v386_v3, %v1058_v9  ;;  %v451_v47 = vstv %s1145_s12  ;;  %s1237_s24 = sld [smem:[#allocation3 + $0x105]] }
  0x40   :  { %v1240_v48 = vadd.f32 %v387_v5, %v1061_v10  ;;  %v1243_v49 = vadd.f32 %v408_v56, %v1064_v11  ;;  %v1246_v0 = vadd.f32 %v409_v32, %v1067_v12  ;;  %v473_v1 = vstv %s1151_s13  ;;  %s1249_s2 = sld [smem:[#allocation3 + $0x106]] }
  0x41   :  { %v216_v2 = vstv %s1179_s5  ;;  %v1253_v9 = vadd.f32 %v430_v29, %v1072_v14  ;;  %v452_v50 = vmul.f32 %v451_v47, %v1050_v7  ;;  %v453_v52 = vmul.f32 %v451_v47, %v1055_v8  ;;  %s1257_s16 = sld [smem:[#allocation3 + $0x107]] }
  0x42   :  { %v217_v10 = vmul.f32 %v216_v2, %v1220_v61  ;;  %v218_v11 = vmul.f32 %v216_v2, %v1225_v62  ;;  %v236_v12 = vstv %s1189_s29  ;;  %v1263_v3 = vadd.f32 %v431_v57, %v1075_v15  ;;  %s1265_s1 = sld [smem:[#allocation3 + $0x108]] }
  0x43   :  { %v258_v14 = vstv %s1195_s10  ;;  %v1269_v5 = vmul.f32 %v473_v1, %v1050_v7  ;;  %v1272_v6 = vmul.f32 %v473_v1, %v1055_v8  ;;  %s1275_s19 = sld [smem:[#allocation3 + $0x109]]  ;;  %v237_v56 = vmul.f32 %v236_v12, %v1220_v61 }
  0x44   :  { %v238_v32 = vmul.f32 %v236_v12, %v1225_v62  ;;  %v259_v15 = vmul.f32 %v258_v14, %v1220_v61  ;;  %v260_v29 = vmul.f32 %v258_v14, %v1225_v62  ;;  %s1281_s26 = sld [smem:[#allocation3 + $0x10a]]  ;;  %v280_v57 = vstv %s1205_s6 }
  0x45   :  { %v302_v47 = vstv %s1215_s14  ;;  %v1286_v1 = vadd.f32 %v452_v50, %v1078_v17  ;;  %v1289_v2 = vadd.f32 %v453_v52, %v1088_v33  ;;  %v219_v38 = vadd.f32 %v217_v10, %v1135_v55  ;;  %s1295_s27 = sld [smem:[#allocation3 + $0x10b]] }
  0x46   :  { %v220_v46 = vadd.f32 %v218_v11, %v1138_v31  ;;  %v281_v12 = vmul.f32 %v280_v57, %v1220_v61  ;;  %v282_v60 = vmul.f32 %v280_v57, %v1225_v62  ;;  %v303_v14 = vmul.f32 %v302_v47, %v1220_v61  ;;  %s1313_s30 = sld [smem:[#allocation3 + $0x10c]] }
  0x47   :  { %v304_v17 = vmul.f32 %v302_v47, %v1225_v62  ;;  %v324_v50 = vstv %s1237_s24  ;;  %v346_v36 = vstv %s1249_s2  ;;  %v239_v33 = vadd.f32 %v237_v56, %v1154_v44  ;;  %s1319_s9 = sld [smem:[#allocation5]] }
  0x48   :  { %v240_v55 = vadd.f32 %v238_v32, %v1157_v42  ;;  %v261_v31 = vadd.f32 %v259_v15, %v1160_v54  ;;  %v262_v52 = vadd.f32 %v260_v29, %v1163_v22  ;;  %v1306_v10 = vadd.f32 %v281_v12, %v1166_v16  ;;  %s1325_s0 = sld [smem:[#allocation5 + $0x1]] }
  0x49   :  { %v1309_v11 = vadd.f32 %v282_v60, %v1169_v30  ;;  %v325_v57 = vmul.f32 %v324_v50, %v1220_v61  ;;  %v326_v47 = vmul.f32 %v324_v50, %v1225_v62  ;;  %v347_v44 = vmul.f32 %v346_v36, %v1220_v61  ;;  %s1331_s17 = sld [smem:[#allocation5 + $0x2]] }
  0x4a   :  { %v348_v42 = vmul.f32 %v346_v36, %v1225_v62  ;;  %v368_v54 = vstv %s1257_s16  ;;  %v390_v22 = vstv %s1265_s1  ;;  %v305_v16 = vadd.f32 %v303_v14, %v1182_v4  ;;  %s1341_s18 = sld [smem:[#allocation5 + $0x3]] }
  0x4b   :  { %v306_v30 = vadd.f32 %v304_v17, %v1185_v13  ;;  %v369_v60 = vmul.f32 %v368_v54, %v1220_v61  ;;  %v370_v56 = vmul.f32 %v368_v54, %v1225_v62  ;;  %v391_v32 = vmul.f32 %v390_v22, %v1220_v61  ;;  %s1351_s11 = sld [smem:[#allocation5 + $0x4]] }
  0x4c   :  { %v392_v15 = vmul.f32 %v390_v22, %v1225_v62  ;;  %v412_v29 = vstv %s1275_s19  ;;  %v434_v36 = vstv %s1281_s26  ;;  %v1334_v12 = vadd.f32 %v325_v57, %v1198_v53  ;;  %s1376_s22 = sld [smem:[#allocation5 + $0x5]] }
  0x4d   :  { %v1337_v4 = vadd.f32 %v326_v47, %v1201_v37  ;;  %v413_v13 = vmul.f32 %v412_v29, %v1220_v61  ;;  %v414_v14 = vmul.f32 %v412_v29, %v1225_v62  ;;  %v1344_v17 = vadd.f32 %v347_v44, %v1208_v51  ;;  %s1388_s25 = sld [smem:[#allocation5 + $0x6]] }
  0x4e   :  { %v1347_v50 = vadd.f32 %v348_v42, %v1211_v43  ;;  %v435_v54 = vmul.f32 %v434_v36, %v1220_v61  ;;  %v436_v53 = vmul.f32 %v434_v36, %v1225_v62  ;;  %v1354_v37 = vadd.f32 %v369_v60, %v1228_v63  ;;  %s1396_s28 = sld [smem:[#allocation5 + $0x7]] }
  0x4f   :  { %v1357_v57 = vadd.f32 %v370_v56, %v1231_v41  ;;  %v1360_v47 = vadd.f32 %v391_v32, %v1234_v45  ;;  %v456_v51 = vstv %s1295_s27  ;;  %v1364_v43 = vadd.f32 %v392_v15, %v1240_v48  ;;  %s1400_s12 = sld [smem:[#allocation5 + $0x8]] }
  0x50   :  { %v1367_v44 = vadd.f32 %v413_v13, %v1243_v49  ;;  %v1370_v42 = vadd.f32 %v414_v14, %v1246_v0  ;;  %v1374_v63 = vadd.f32 %v1269_v5, %v1091_v39  ;;  %v221_v41 = vstv %s1319_s9  ;;  %s1410_s13 = sld [smem:[#allocation5 + $0x9]] }
  0x51   :  { %v1380_v45 = vadd.f32 %v435_v54, %v1253_v9  ;;  %v1383_v48 = vadd.f32 %v436_v53, %v1263_v3  ;;  %v1386_v49 = vmul.f32 %v456_v51, %v1220_v61  ;;  %v222_v0 = vadd.f32 %v221_v41, %v219_v38  ;;  %s1414_s5 = sld [smem:[#allocation5 + $0xa]] }
  0x52   :  { %v223_v22 = vadd.f32 %v221_v41, %v220_v46  ;;  %v241_v39 = vstv %s1325_s0  ;;  %v1392_v5 = vmul.f32 %v456_v51, %v1225_v62  ;;  %v263_v9 = vstv %s1331_s17  ;;  %s1426_s29 = sld [smem:[#allocation5 + $0xb]] }
  0x53   :  { %v242_v60 = vadd.f32 %v241_v39, %v239_v33  ;;  %v243_v56 = vadd.f32 %v241_v39, %v240_v55  ;;  %v478_v32 = vstv %s1313_s30  ;;  %v224_v15 = vmax.f32 %v222_v0, 0.0  ;;  %s1436_s10 = sld [smem:[#allocation5 + $0xc]] }
  0x54   :  { %v225_v3 = vmax.f32 %v223_v22, 0.0  ;;  %v264_v29 = vadd.f32 %v263_v9, %v261_v31  ;;  %v265_v36 = vadd.f32 %v263_v9, %v262_v52  ;;  %v285_v54 = vstv %s1341_s18  ;;  %s1440_s6 = sld [smem:[#allocation3 + $0x10d]] }
  0x55   :  { %v244_v13 = vmax.f32 %v242_v60, 0.0  ;;  %v245_v14 = vmax.f32 %v243_v56, 0.0  ;;  %v307_v38 = vstv %s1351_s11  ;;  %v226_v46 = vmul.f32 %v224_v15, %v897_v18  ;;  %s1444_s14 = sld [smem:[#allocation3 + $0x8e]] }
  0x56   :  { %v227_v53 = vmul.f32 %v225_v3, %v897_v18  ;;  %v266_v33 = vmax.f32 %v264_v29, 0.0  ;;  %v267_v55 = vmax.f32 %v265_v36, 0.0  ;;  %v286_v52 = vadd.f32 %v285_v54, %v1306_v10  ;;  %s1452_s3 = sld [smem:[#allocation5 + $0xd]] }
  0x57   :  { %v246_v51 = vmul.f32 %v244_v13, %v899_v19  ;;  %v247_v31 = vmul.f32 %v245_v14, %v899_v19  ;;  %v287_v41 = vadd.f32 %v285_v54, %v1309_v11  ;;  %v308_v39 = vadd.f32 %v307_v38, %v305_v16  ;;  %s1463_s15 = sld [smem:[#allocation3 + $0x10e]] }
  0x58   :  { %v268_v0 = vmul.f32 %v266_v33, %v901_v20  ;;  %v269_v22 = vmul.f32 %v267_v55, %v901_v20  ;;  %v309_v60 = vadd.f32 %v307_v38, %v306_v30  ;;  %v288_v9 = vmax.f32 %v286_v52, 0.0  ;;  %s1477_s20 = sld [smem:[#allocation5 + $0xe]] }
  0x59   :  { %v248_v56 = vadd.f32 %v246_v51, %v226_v46  ;;  %v249_v18 = vadd.f32 %v247_v31, %v227_v53  ;;  %v289_v15 = vmax.f32 %v287_v41, 0.0  ;;  %v310_v3 = vmax.f32 %v308_v39, 0.0  ;;  %s1485_s23 = sld [smem:[#allocation3 + $0x8f]] }
  0x5a   :  { %v311_v29 = vmax.f32 %v309_v60, 0.0  ;;  %v329_v36 = vstv %s1376_s22  ;;  %v351_v19 = vstv %s1388_s25  ;;  %v290_v20 = vmul.f32 %v288_v9, %v903_v21  ;;  %s1490_s24 = sld [smem:[#allocation3 + $0x10f]] }
  0x5b   :  { %v270_v10 = vadd.f32 %v268_v0, %v248_v56  ;;  %v271_v11 = vadd.f32 %v269_v22, %v249_v18  ;;  %v291_v16 = vmul.f32 %v289_v15, %v903_v21  ;;  %v312_v30 = vmul.f32 %v310_v3, %v910_v23 }
  0x5c   :  { %v313_v13 = vmul.f32 %v311_v29, %v910_v23  ;;  %v330_v14 = vadd.f32 %v329_v36, %v1334_v12  ;;  %v331_v54 = vadd.f32 %v329_v36, %v1337_v4  ;;  %v352_v53 = vadd.f32 %v351_v19, %v1344_v17 }
  0x5d   :  { %v292_v38 = vadd.f32 %v290_v20, %v270_v10  ;;  %v293_v46 = vadd.f32 %v291_v16, %v271_v11  ;;  %v353_v33 = vadd.f32 %v351_v19, %v1347_v50  ;;  %v373_v31 = vstv %s1396_s28 }
  0x5e   :  { %v332_v55 = vmax.f32 %v330_v14, 0.0  ;;  %v333_v51 = vmax.f32 %v331_v54, 0.0  ;;  %v395_v52 = vstv %s1400_s12  ;;  %v354_v0 = vmax.f32 %v352_v53, 0.0 }
  0x5f   :  { %v314_v21 = vadd.f32 %v312_v30, %v292_v38  ;;  %v315_v41 = vadd.f32 %v313_v13, %v293_v46  ;;  %v355_v23 = vmax.f32 %v353_v33, 0.0  ;;  %v374_v17 = vadd.f32 %v373_v31, %v1354_v37 }
  0x60   :  { %v334_v12 = vmul.f32 %v332_v55, %v912_v24  ;;  %v335_v4 = vmul.f32 %v333_v51, %v912_v24  ;;  %v375_v50 = vadd.f32 %v373_v31, %v1357_v57  ;;  %v356_v22 = vmul.f32 %v354_v0, %v914_v25 }
  0x61   :  { %v357_v39 = vmul.f32 %v355_v23, %v914_v25  ;;  %v396_v60 = vadd.f32 %v395_v52, %v1360_v47  ;;  %v397_v56 = vadd.f32 %v395_v52, %v1364_v43  ;;  %v376_v15 = vmax.f32 %v374_v17, 0.0 }
  0x62   :  { %v336_v18 = vadd.f32 %v334_v12, %v314_v21  ;;  %v337_v9 = vadd.f32 %v335_v4, %v315_v41  ;;  %v377_v3 = vmax.f32 %v375_v50, 0.0  ;;  %v417_v36 = vstv %s1410_s13 }
  0x63   :  { %v398_v29 = vmax.f32 %v396_v60, 0.0  ;;  %v399_v24 = vmax.f32 %v397_v56, 0.0  ;;  %v439_v37 = vstv %s1414_s5  ;;  %v378_v25 = vmul.f32 %v376_v15, %v923_v27 }
  0x64   :  { %v358_v57 = vadd.f32 %v356_v22, %v336_v18  ;;  %v359_v19 = vadd.f32 %v357_v39, %v337_v9  ;;  %v379_v47 = vmul.f32 %v377_v3, %v923_v27  ;;  %v418_v10 = vadd.f32 %v417_v36, %v1367_v44 }
  0x65   :  { %v400_v43 = vmul.f32 %v398_v29, %v917_v26  ;;  %v459_v11 = vadd.f32 %v1386_v49, %v1286_v1  ;;  %v477_v20 = vadd.f32 %v1272_v6, %v1094_v40  ;;  %v401_v30 = vmul.f32 %v399_v24, %v917_v26 }
  0x66   :  { %v380_v16 = vadd.f32 %v378_v25, %v358_v57  ;;  %v1456_v27 = vadd.f32 %v417_v36, %v1370_v42  ;;  %v440_v13 = vadd.f32 %v439_v37, %v1380_v45  ;;  %v381_v14 = vadd.f32 %v379_v47, %v359_v19 }
  0x67   :  { %v420_v44 = vmax.f32 %v418_v10, 0.0  ;;  %v461_v54 = vstv %s1426_s29  ;;  %v479_v1 = vmul.f32 %v478_v32, %v1220_v61  ;;  %v460_v26 = vadd.f32 %v1392_v5, %v1289_v2  ;;  %v1576_v10 = vld [vmem:[#allocation17_spill] sm:$0xff] }
  0x68   :  { %v402_v40 = vadd.f32 %v400_v43, %v380_v16  ;;  %v442_v6 = vmax.f32 %v440_v13, 0.0  ;;  %v1572_v42 = vstv %s1173_s4  ;;  %v1472_v38 = vadd.f32 %v439_v37, %v1383_v48  ;;  %s1502_s4 = sld [smem:[#allocation5 + $0xf]]  ;;  %v1575_v37 = vld [vmem:[#allocation16_spill] sm:$0xff] }
  0x69   :  { %v496_v49 = vmul.f32 %v1572_v42, %v1050_v7  ;;  %v422_v45 = vmul.f32 %v420_v44, %v926_v28  ;;  %v462_v46 = vadd.f32 %v461_v54, %v459_v11  ;;  %v480_v53 = vmul.f32 %v478_v32, %v1225_v62  ;;  %v1579_v44 = vld [vmem:[#allocation12_spill] sm:$0xff] }
  0x6a   :  { %v444_v33 = vmul.f32 %v442_v6, %v946_v34  ;;  %v481_v55 = vadd.f32 %v479_v1, %v1374_v63  ;;  %v483_v2 = vstv %s1436_s10  ;;  %v1573_v5 = vmov %v1572_v42 }
  0x6b   :  { %v497_v51 = vmul.f32 %v1573_v5, %v1055_v8  ;;  %v1487_v48 = vadd.f32 %v401_v30, %v381_v14  ;;  %v421_v31 = vmax.f32 %v1456_v27, 0.0  ;;  %v424_v52 = vadd.f32 %v422_v45, %v402_v40  ;;  %v1577_v27 = vld [vmem:[#allocation11_spill] sm:$0xff] }
  0x6c   :  { %v464_v32 = vmax.f32 %v462_v46, 0.0  ;;  %v482_v21 = vadd.f32 %v480_v53, %v477_v20  ;;  %v484_v41 = vadd.f32 %v483_v2, %v481_v55  ;;  %v498_v63 = vadd.f32 %v496_v49, %v1109_v58  ;;  %v1581_v49 = vld [vmem:[#allocation14_spill] sm:$0xff] }
  0x6d   :  { %v500_v0 = vstv %s1440_s6  ;;  %v446_v23 = vadd.f32 %v444_v33, %v424_v52  ;;  %v499_v4 = vadd.f32 %v497_v51, %v1112_v59  ;;  %v505_v39 = vstv %s1452_s3  ;;  %v1574_v59 = vld [vmem:[#allocation13_spill] sm:$0xff] }
  0x6e   :  { %v466_v12 = vmul.f32 %v464_v32, %v949_v35  ;;  %v501_v17 = vmul.f32 %v500_v0, %v1220_v61  ;;  %v486_v50 = vmax.f32 %v484_v41, 0.0  ;;  %v502_v22 = vmul.f32 %v500_v0, %v1225_v62 }
  0x6f   :  { %v517_v60 = vstv %s1444_s14  ;;  %v443_v56 = vmax.f32 %v1472_v38, 0.0  ;;  %v463_v18 = vadd.f32 %v461_v54, %v460_v26  ;;  %v522_v24 = vstv %s1463_s15 }
  0x70   :  { %v503_v9 = vadd.f32 %v501_v17, %v498_v63  ;;  %v518_v58 = vmul.f32 %v517_v60, %v1050_v7  ;;  %v468_v15 = vadd.f32 %v466_v12, %v446_v23  ;;  %v488_v3 = vmul.f32 %v486_v50, %v1574_v59 }
  0x71   :  { %v519_v29 = vmul.f32 %v517_v60, %v1055_v8  ;;  %v523_v19 = vmul.f32 %v522_v24, %v1220_v61  ;;  %v524_v25 = vmul.f32 %v522_v24, %v1225_v62  ;;  %v485_v47 = vadd.f32 %v483_v2, %v482_v21  ;;  %v1585_v60 = vld [vmem:[#allocation10_spill] sm:$0xff] }
  0x72   :  { %v506_v36 = vadd.f32 %v505_v39, %v503_v9  ;;  %v520_v57 = vadd.f32 %v518_v58, %v1575_v37  ;;  %v504_v43 = vadd.f32 %v502_v22, %v499_v4  ;;  %v527_v20 = vstv %s1477_s20  ;;  %v1583_v22 = vld [vmem:[#allocation9_spill] sm:$0xff] }
  0x73   :  { %v521_v11 = vadd.f32 %v519_v29, %v1576_v10  ;;  %v1578_v13 = vstv %s980_s21  ;;  %v490_v40 = vadd.f32 %v488_v3, %v468_v15  ;;  %v539_v26 = vstv %s1485_s23 }
  0x74   :  { %v508_v16 = vmax.f32 %v506_v36, 0.0  ;;  %v525_v30 = vadd.f32 %v523_v19, %v520_v57  ;;  %v537_v14 = vmul.f32 %v1578_v13, %v1577_v27  ;;  %v1580_v54 = vmov %v1578_v13 }
  0x75   :  { %v538_v1 = vmul.f32 %v1580_v54, %v1579_v44  ;;  %v526_v6 = vadd.f32 %v524_v25, %v521_v11  ;;  %v544_v42 = vstv %s1490_s24  ;;  %v540_v46 = vmul.f32 %v539_v26, %v1050_v7  ;;  %v1582_v7 = vld [vmem:[#allocation15_spill] sm:$0xff] }
  0x76   :  { %v510_v45 = vmul.f32 %v508_v16, %v1581_v49  ;;  %v528_v38 = vadd.f32 %v527_v20, %v525_v30  ;;  %v541_v53 = vmul.f32 %v539_v26, %v1055_v8  ;;  %v465_v33 = vmax.f32 %v463_v18, 0.0 }
  0x77   :  { %v507_v55 = vadd.f32 %v505_v39, %v504_v43  ;;  %v545_v2 = vmul.f32 %v544_v42, %v1220_v61  ;;  %v546_v5 = vmul.f32 %v544_v42, %v1225_v62  ;;  %v487_v51 = vmax.f32 %v485_v47, 0.0 }
  0x78   :  { %v530_v52 = vmax.f32 %v528_v38, 0.0  ;;  %v542_v32 = vadd.f32 %v540_v46, %v537_v14  ;;  %v543_v21 = vadd.f32 %v541_v53, %v538_v1  ;;  %v529_v41 = vadd.f32 %v527_v20, %v526_v6 }
  0x79   :  { %v549_v63 = vstv %s1502_s4  ;;  %v423_v0 = vmul.f32 %v421_v31, %v926_v28  ;;  %v445_v23 = vmul.f32 %v443_v56, %v946_v34  ;;  %v512_v12 = vadd.f32 %v510_v45, %v490_v40 }
  0x7a   :  { %v532_v4 = vmul.f32 %v530_v52, %v1582_v7  ;;  %v547_v8 = vadd.f32 %v545_v2, %v542_v32  ;;  %v548_v17 = vadd.f32 %v546_v5, %v543_v21  ;;  %v509_v50 = vmax.f32 %v507_v55, 0.0 }
  0x7b   :  { %v425_v61 = vadd.f32 %v423_v0, %v1487_v48  ;;  %v467_v62 = vmul.f32 %v465_v33, %v949_v35  ;;  %v1584_v39 = vsub.s32 7, %v1583_v22  ;;  %v531_v15 = vmax.f32 %v529_v41, 0.0 }
  0x7c   :  { %v550_v9 = vadd.f32 %v549_v63, %v547_v8  ;;  %v551_v58 = vadd.f32 %v549_v63, %v548_v17  ;;  %v489_v34 = vmul.f32 %v487_v51, %v1574_v59  ;;  %v534_v31 = vadd.f32 %v532_v4, %v512_v12 }
  0x7d   :  { %v185_v18 = vrot.slane %v1585_v60, %v1584_v39  ;;  %v447_v28 = vadd.f32 %v445_v23, %v425_v61  ;;  %v511_v24 = vmul.f32 %v509_v50, %v1581_v49  ;;  %v533_v35 = vmul.f32 %v531_v15, %v1582_v7 }
  0x7e   :  { %v552_v56 = vmax.f32 %v550_v9, 0.0  ;;  %v553_v3 = vmax.f32 %v551_v58, 0.0  ;;  %v558_v59 = vstv %s1553_s7 }
  0x7f   :  { %v469_v29 = vadd.f32 %v467_v62, %v447_v28 }
  0x80   :  { %v554_v36 = vmul.f32 %v552_v56, %v185_v18  ;;  %v555_v19 = vmul.f32 %v553_v3, %v185_v18 }
  0x81   :  { %v491_v48 = vadd.f32 %v489_v34, %v469_v29 }
  0x82   :  { %v556_v37 = vadd.f32 %v554_v36, %v534_v31 }
  0x83   :  { %v513_v57 = vadd.f32 %v511_v24, %v491_v48 }
  0x84   :  { %755 = vmatprep.mubr.f32.mxu0 %v556_v37 }
  0x85   :  { %v535_v25 = vadd.f32 %v533_v35, %v513_v57 }
  0x87   :  { %v557_v47 = vadd.f32 %v555_v19, %v535_v25 }
  0x89   :  { %756 = vmatmul.mubr.f32.vlgmr.msra.gmra.mxu0 %v557_v47 }
 0x149   :  { %v757_v43 = vpop.f32.mrf.mxu0 }
 0x14a   :  { %v631_v10 = vadd.f32 %v757_v43, %v558_v59 }
 0x14b   :  { %v625_v11 = vpop.f32.mrf.mxu0 }
 0x14c   :  { %636 = vst.msk [vmem:[%s1554_s8 + $0x8] sm:$0xff] %vm634_vm0, %v631_v10  ;;  %v626_v20 = vadd.f32 %v625_v11, %v558_v59 }
 0x14e   :  { %635 = vst.msk [vmem:[%s1554_s8] sm:$0xff] %vm634_vm0, %v626_v20 }
 0x14f   :  { %641 = vsyncpa [#allocation4], 1 }
 0x150   :  { %642 = vsyncpa [#allocation6], 1 }

</bundles_post_ra>
